<compile_context>
chip_gen: v5e
topology: v5e:2x2
jax: 0.10.0
libtpu: 0.0.40
codegen_flags: <defaults>
</compile_context>

<pallas_src>
import functools
import math

import jax
import jax.numpy as jnp
from jax.experimental import pallas as pl
from jax.experimental.pallas import tpu as pltpu


def _time_embed_kernel(x_ref, w1_ref, b1_ref, w2_ref, b2_ref, o_ref,
                       *, compute_dtype=None):
    x = x_ref[...]
    w1 = w1_ref[...]
    w2 = w2_ref[...]
    if compute_dtype is not None:
        # bf16 MXU operands on v6e/v7x; accumulate and add bias in f32.
        x = x.astype(compute_dtype)
        w1 = w1.astype(compute_dtype)
        w2 = w2.astype(compute_dtype)

    # Layer 1: x @ W1 + b1   (f32 accumulation on the MXU)
    h = jnp.dot(x, w1, preferred_element_type=jnp.float32)
    h = h + b1_ref[...].astype(jnp.float32)
    # SiLU: x * sigmoid(x) — sigmoid's exp goes to the EUP (free slot here).
    h = h * jax.nn.sigmoid(h)

    # Layer 2: h @ W2 + b2
    h2 = h if compute_dtype is None else h.astype(compute_dtype)
    out = jnp.dot(h2, w2, preferred_element_type=jnp.float32)
    out = out + b2_ref[...].astype(jnp.float32)
    o_ref[...] = out.astype(o_ref.dtype)


def _nbytes(shape, dtype):
    return int(math.prod(shape)) * jnp.dtype(dtype).itemsize


def time_embed_mlp(time_emb, w1, b1, w2, b2, *, block_b=None,
                   compute_dtype=None):
    """2-layer SiLU MLP of TimeStyleSeperateEmbed in one Pallas call.

    time_emb: [B, Ct]
    w1: [Ct, Co], b1: [1, Co], w2: [Co, Co], b2: [1, Co]
    block_b: if set (and < B), tile the batch axis with this tile size
             (must divide B and be a multiple of 8).  Weights stay
             VMEM-resident across steps; the batch axis is 'parallel'.
    compute_dtype: e.g. jnp.bfloat16 to feed the MXU bf16 operands
             (accumulation / bias add stay f32).  None = use input dtype.
    returns [B, Co]
    """
    B, Ct = time_emb.shape
    Co = w1.shape[1]
    out_dtype = time_emb.dtype

    kernel = functools.partial(_time_embed_kernel, compute_dtype=compute_dtype)

    flops = 2 * B * Ct * Co + 2 * B * Co * Co + 3 * B * Co
    transcendentals = B * Co  # one exp per element in the SiLU
    bytes_accessed = (
        _nbytes((B, Ct), time_emb.dtype)
        + _nbytes(w1.shape, w1.dtype) + _nbytes(b1.shape, b1.dtype)
        + _nbytes(w2.shape, w2.dtype) + _nbytes(b2.shape, b2.dtype)
        + _nbytes((B, Co), out_dtype))
    cost = pl.CostEstimate(flops=flops, transcendentals=transcendentals,
                           bytes_accessed=bytes_accessed)

    if block_b is None or block_b >= B:
        # Grid-less: whole problem lives in VMEM, no pipeline machinery.
        return pl.pallas_call(
            kernel,
            out_shape=jax.ShapeDtypeStruct((B, Co), out_dtype),
            in_specs=[pl.BlockSpec(memory_space=pltpu.MemorySpace.VMEM)] * 5,
            out_specs=pl.BlockSpec(memory_space=pltpu.MemorySpace.VMEM),
            cost_estimate=cost,
        )(time_emb, w1, b1, w2, b2)

    # Batch-tiled path for large B.
    assert B % block_b == 0, "block_b must divide B"
    assert block_b % 8 == 0, "block_b must be a multiple of 8 (sublane tiling)"
    grid = (B // block_b,)
    return pl.pallas_call(
        kernel,
        out_shape=jax.ShapeDtypeStruct((B, Co), out_dtype),
        grid=grid,
        in_specs=[
            pl.BlockSpec((block_b, Ct), lambda i: (i, 0)),
            pl.BlockSpec((Ct, Co), lambda i: (0, 0)),   # weights stay resident
            pl.BlockSpec((1, Co), lambda i: (0, 0)),
            pl.BlockSpec((Co, Co), lambda i: (0, 0)),
            pl.BlockSpec((1, Co), lambda i: (0, 0)),
        ],
        out_specs=pl.BlockSpec((block_b, Co), lambda i: (i, 0)),
        compiler_params=pltpu.CompilerParams(
            dimension_semantics=("parallel",)),
        cost_estimate=cost,
    )(time_emb, w1, b1, w2, b2)


def init_params(key, time_channels, time_out_channels, dtype=jnp.float32):
    """Deterministic nn.Linear-style init (uniform(-1/sqrt(fan_in), +...))."""
    k1, k2, k3, k4 = jax.random.split(key, 4)
    bound1 = 1.0 / math.sqrt(time_channels)
    bound2 = 1.0 / math.sqrt(time_out_channels)
    w1 = jax.random.uniform(k1, (time_channels, time_out_channels),
                            dtype, -bound1, bound1)
    b1 = jax.random.uniform(k2, (1, time_out_channels), dtype, -bound1, bound1)
    w2 = jax.random.uniform(k3, (time_out_channels, time_out_channels),
                            dtype, -bound2, bound2)
    b2 = jax.random.uniform(k4, (1, time_out_channels), dtype, -bound2, bound2)
    return w1, b1, w2, b2


def time_style_seperate_embed_forward(params, time_emb=None, cond=None,
                                      *, block_b=None, compute_dtype=None):
    """Mirrors TimeStyleSeperateEmbed.forward semantics (returns a dict)."""
    w1, b1, w2, b2 = params
    if time_emb is not None:
        time_emb = time_embed_mlp(time_emb, w1, b1, w2, b2,
                                  block_b=block_b, compute_dtype=compute_dtype)
    style = cond  # nn.Identity()
    return {"style": style, "time_emb": time_emb, "emb": style}


def _reference_mlp(x, params):
    w1, b1, w2, b2 = params
    h = x @ w1 + b1
    h = h * jax.nn.sigmoid(h)
    return h @ w2 + b2


if __name__ == "__main__":
    # Shapes consistent with the module: time_channels=32, time_out_channels=128.
    Ct, Co = 32, 128
    key = jax.random.PRNGKey(0)
    kp, kt, kt2, kc = jax.random.split(key, 4)

    params = init_params(kp, Ct, Co)

    # --- 1) Small-batch grid-less path (the typical case for this module) ---
    B = 8
    time_emb_in = jax.random.normal(kt, (B, Ct), jnp.float32)
    cond_in = jax.random.normal(kc, (B, Co), jnp.float32)

    out = time_style_seperate_embed_forward(params, time_emb=time_emb_in,
                                            cond=cond_in)
    jax.block_until_ready(out["time_emb"])
    ref = _reference_mlp(time_emb_in, params)
    assert out["time_emb"].shape == (B, Co)
    assert jnp.allclose(out["time_emb"], ref, atol=1e-5, rtol=1e-5)
    assert out["style"] is cond_in and out["emb"] is cond_in

    # --- 2) Batch-tiled path (structure used when B is large) ---
    B2 = 16
    time_emb_big = jax.random.normal(kt2, (B2, Ct), jnp.float32)
    out_tiled = time_embed_mlp(time_emb_big, *params, block_b=8)
    jax.block_until_ready(out_tiled)
    ref_big = _reference_mlp(time_emb_big, params)
    assert jnp.allclose(out_tiled, ref_big, atol=1e-5, rtol=1e-5)

    # --- 3) bf16 MXU-operand path (v6e/v7x option), f32 accumulation ---
    out_bf16 = time_embed_mlp(time_emb_in, *params,
                              compute_dtype=jnp.bfloat16)
    jax.block_until_ready(out_bf16)
    assert jnp.allclose(out_bf16, ref, atol=1e-1, rtol=1e-2)

    print("KERNEL_OK")
</pallas_src>

<mosaic_0001>
module attributes {stable_mosaic.version = 11 : i64} {
  func.func @_time_embed_kernel(%arg0: memref<8x32xf32, #tpu.memory_space<vmem>>, %arg1: memref<32x128xf32, #tpu.memory_space<vmem>>, %arg2: memref<1x128xf32, #tpu.memory_space<vmem>>, %arg3: memref<128x128xf32, #tpu.memory_space<vmem>>, %arg4: memref<1x128xf32, #tpu.memory_space<vmem>>, %arg5: memref<8x128xf32, #tpu.memory_space<vmem>>) attributes {dimension_semantics = [], scalar_prefetch = 0 : i64, scratch_operands = 0 : i64, tpu.core_type = #tpu.core_type<tc>} {
    %c0 = arith.constant 0 : index
    %c0_0 = arith.constant 0 : index
    %0 = vector.load %arg0[%c0, %c0_0] : memref<8x32xf32, #tpu.memory_space<vmem>>, vector<8x32xf32>
    %c0_1 = arith.constant 0 : index
    %c0_2 = arith.constant 0 : index
    %1 = vector.load %arg1[%c0_1, %c0_2] : memref<32x128xf32, #tpu.memory_space<vmem>>, vector<32x128xf32>
    %c0_3 = arith.constant 0 : index
    %c0_4 = arith.constant 0 : index
    %2 = vector.load %arg3[%c0_3, %c0_4] : memref<128x128xf32, #tpu.memory_space<vmem>>, vector<128x128xf32>
    %cst = arith.constant dense<0.000000e+00> : vector<8x128xf32>
    %3 = tpu.matmul %0, %1, %cst {dimension_numbers = #tpu.dot_dimension_numbers<[1], [0], [0], [1], [0, 0, 1, 1], [], []>} : vector<8x32xf32>, vector<32x128xf32>, vector<8x128xf32> -> vector<8x128xf32>
    %c0_5 = arith.constant 0 : index
    %c0_6 = arith.constant 0 : index
    %4 = vector.load %arg2[%c0_5, %c0_6] : memref<1x128xf32, #tpu.memory_space<vmem>>, vector<1x128xf32>
    %5 = vector.broadcast %4 : vector<1x128xf32> to vector<8x128xf32>
    %6 = arith.addf %3, %5 : vector<8x128xf32>
    %7 = arith.negf %6 : vector<8x128xf32>
    %8 = math.exp %7 : vector<8x128xf32>
    %cst_7 = arith.constant 1.000000e+00 : f32
    %9 = vector.broadcast %cst_7 : f32 to vector<8x128xf32>
    %10 = arith.addf %9, %8 : vector<8x128xf32>
    %11 = arith.divf %9, %10 : vector<8x128xf32>
    %12 = arith.mulf %6, %11 : vector<8x128xf32>
    %cst_8 = arith.constant dense<0.000000e+00> : vector<8x128xf32>
    %13 = tpu.matmul %12, %2, %cst_8 {dimension_numbers = #tpu.dot_dimension_numbers<[1], [0], [0], [1], [0, 0, 1, 1], [], []>} : vector<8x128xf32>, vector<128x128xf32>, vector<8x128xf32> -> vector<8x128xf32>
    %c0_9 = arith.constant 0 : index
    %c0_10 = arith.constant 0 : index
    %14 = vector.load %arg4[%c0_9, %c0_10] : memref<1x128xf32, #tpu.memory_space<vmem>>, vector<1x128xf32>
    %15 = vector.broadcast %14 : vector<1x128xf32> to vector<8x128xf32>
    %16 = arith.addf %13, %15 : vector<8x128xf32>
    %c0_11 = arith.constant 0 : index
    %c0_12 = arith.constant 0 : index
    %17 = vector.load %arg5[%c0_11, %c0_12] : memref<8x128xf32, #tpu.memory_space<vmem>>, vector<8x128xf32>
    tpu.vector_store %arg5[%c0_11, %c0_12], %16 {strides = array<i32>} : memref<8x128xf32, #tpu.memory_space<vmem>>, vector<8x128xf32>,
    return
  }
}

</mosaic_0001>

<bundles_post_ra>
// kernel: tpu_custom_call.1
= control target key start
LH: loop header
LB: loop body
LE: loop exit
PB: predicated region body
PF: predicated region fallthrough
CT: control target
= control target key end

     0   :  { %10 = vsyncpa [#allocation3], 0  ;;  %s348_s0 = inlined_call_operand.hbm [shape: f32[8,32], index: 0, kind: input, shape index: {}]   ;;  %s349_s1 = inlined_call_operand.hbm [shape: f32[32,128], index: 1, kind: input, shape index: {}]   ;;  %s350_s2 = inlined_call_operand.vmem [shape: f32[1,128], index: 2, kind: input, shape index: {}]   ;;  %s351_s3 = inlined_call_operand.hbm [shape: f32[128,128], index: 3, kind: input, shape index: {}]   ;;  %s352_s4 = inlined_call_operand.vmem [shape: f32[1,128], index: 4, kind: input, shape index: {}]   ;;  %s353_s5 = inlined_call_operand.hbm [shape: f32[8,128], index: 5, kind: output, shape index: {}]  }
   0x1   :  { %11 = vsyncpa [#allocation6], 0  ;;  %s28_s20 = sshll.u32 %s349_s1, 4  ;;  %s29_s20 = int_to_ptr.hbm [resolvable:$true] %s28_s20 }
   0x2   :  { %12 = vsyncpa [#allocation4], 0  ;;  %s294_s21 = smov [#allocation5]   ;;  %s18_s25 = sshll.u32 %s348_s0, 4  ;;  %s19_s25 = int_to_ptr.hbm [resolvable:$true] %s18_s25 }
   0x3   :  { %s30_s22 = sshll.u32 %s294_s21, 4  ;;  %s295_s26 = smov 128   ;;  %s31_s22 = int_to_ptr.vmem [resolvable:$true] %s30_s22 }
   0x4   :  { %s296_s27 = smov 8   ;;  %s297_s28 = smov [#allocation2]  }
   0x5   :  { %36 = dma.hbm_to_vmem [thread:$0]  %s29_s20, 512, %s31_s22, [#allocation6], %s295_s26, %s295_s26, %s296_s27  }
   0x6   :  { %s20_s29 = sshll.u32 %s297_s28, 4  ;;  %s43_s7 = sshll.u32 %s351_s3, 4  ;;  %s21_s29 = int_to_ptr.vmem [resolvable:$true] %s20_s29  ;;  %s44_s7 = int_to_ptr.hbm [resolvable:$true] %s43_s7 }
   0x7   :  { %23 = dma.hbm_to_vmem [thread:$0]  %s19_s25, 128, %s21_s29, [#allocation3]  }
   0x8   :  { %s298_s1 = smov [#allocation7]  }
   0x9   :  { %s45_s8 = sshll.u32 %s298_s1, 4  ;;  %s46_s8 = int_to_ptr.vmem [resolvable:$true] %s45_s8 }
   0xa   :  { %51 = dma.hbm_to_vmem [thread:$0]  %s44_s7, 2048, %s46_s8, [#allocation6], %s295_s26, %s295_s26, %s296_s27  }
   0xb   :  { %288 = dma.done.wait [#allocation3], 128  }
   0xc   :  { %289 = vsyncadd [#allocation3], 4294967168 }
   0xd   :  { %290 = dma.done.wait [#allocation6], 2560  }
   0xe   :  { %291 = vsyncadd [#allocation6], 4294964736  ;;  %v70_v0 = vld [vmem:[#allocation5 + $0x18] sm:$0xff]  ;;  %v69_v1 = vld [vmem:[#allocation5 + $0x10] sm:$0xff]  ;;  %vm91_vm0 = vcmask 261120   ;;  %s299_s10 = smov [#allocation8]  }
   0xf   :  { %107 = vmatpush.msra.mxu0 %v70_v0  ;;  %v68_v2 = vld [vmem:[#allocation5 + $0x8] sm:$0xff]  ;;  %v67_v3 = vld [vmem:[#allocation5] sm:$0xff]  ;;  %v66_v4 = vld [vmem:[#allocation2] sm:$0xff]  ;;  %s165_s11 = sshll.u32 %s299_s10, 4  ;;  %s167_s14 = sshll.u32 %s353_s5, 4  ;;  %s166_s11 = int_to_ptr.vmem [resolvable:$true] %s165_s11  ;;  %s168_s14 = int_to_ptr.hbm [resolvable:$true] %s167_s14 }
  0x10   :  { %v86_v5 = vld [vmem:[#allocation7 + $0x78] sm:$0xff]  ;;  %v85_v6 = vld [vmem:[#allocation7 + $0x70] sm:$0xff]  ;;  %v84_v7 = vld [vmem:[#allocation7 + $0x68] sm:$0xff] }
  0x11   :  { %108 = vmatpush.msra.mxu0 %v69_v1  ;;  %139 = vmatpush.msra.mxu1 %v86_v5  ;;  %v83_v8 = vld [vmem:[#allocation7 + $0x60] sm:$0xff]  ;;  %v82_v9 = vld [vmem:[#allocation7 + $0x58] sm:$0xff]  ;;  %v81_v10 = vld [vmem:[#allocation7 + $0x50] sm:$0xff] }
  0x12   :  { %v80_v11 = vld [vmem:[#allocation7 + $0x48] sm:$0xff]  ;;  %v79_v12 = vld [vmem:[#allocation7 + $0x40] sm:$0xff]  ;;  %v78_v13 = vld [vmem:[#allocation7 + $0x38] sm:$0xff] }
  0x13   :  { %109 = vmatpush.msra.mxu0 %v68_v2  ;;  %140 = vmatpush.msra.mxu1 %v85_v6  ;;  %v77_v14 = vld [vmem:[#allocation7 + $0x30] sm:$0xff]  ;;  %v76_v15 = vld [vmem:[#allocation7 + $0x28] sm:$0xff]  ;;  %v75_v16 = vld [vmem:[#allocation7 + $0x20] sm:$0xff] }
  0x14   :  { %v74_v17 = vld [vmem:[#allocation7 + $0x18] sm:$0xff]  ;;  %v73_v18 = vld [vmem:[#allocation7 + $0x10] sm:$0xff]  ;;  %v72_v19 = vld [vmem:[#allocation7 + $0x8] sm:$0xff] }
  0x15   :  { %110 = vmatpush.msra.mxu0 %v67_v3  ;;  %141 = vmatpush.msra.mxu1 %v84_v7  ;;  %v186_v20 = vld [vmem:[%s350_s2] ss:$0 sm:$0xff]  ;;  %v71_v21 = vld [vmem:[#allocation7] sm:$0xff] }
  0x16   :  { %178 = vmatmul.msk.f32.vlgmr.msra.gmra.mxu0 %vm91_vm0, %v66_v4  ;;  %v187_v38 = vld [vmem:[%s352_s4] ss:$0 sm:$0xff] }
  0x17   :  { %142 = vmatpush.msra.mxu1 %v83_v8 }
  0x19   :  { %143 = vmatpush.msra.mxu1 %v82_v9 }
  0x1b   :  { %144 = vmatpush.msra.mxu1 %v81_v10 }
  0x1d   :  { %145 = vmatpush.msra.mxu1 %v80_v11 }
  0x1f   :  { %146 = vmatpush.msra.mxu1 %v79_v12 }
  0x21   :  { %147 = vmatpush.msra.mxu1 %v78_v13 }
  0x23   :  { %148 = vmatpush.msra.mxu1 %v77_v14 }
  0x25   :  { %149 = vmatpush.msra.mxu1 %v76_v15 }
  0x27   :  { %150 = vmatpush.msra.mxu1 %v75_v16 }
  0x29   :  { %151 = vmatpush.msra.mxu1 %v74_v17 }
  0x2b   :  { %152 = vmatpush.msra.mxu1 %v73_v18 }
  0x2d   :  { %153 = vmatpush.msra.mxu1 %v72_v19 }
  0x2f   :  { %154 = vmatpush.msra.mxu1 %v71_v21 }
  0x93   :  { %v112_v22 = vpop.f32.mrf.mxu0 }
  0x94   :  { %v113_v23 = vadd.f32 %v186_v20, %v112_v22 }
  0x96   :  { %v179_v24 = vmul.f32 -1.442695, %v113_v23 }
  0x98   :  { %188 = vpow2.f32 %v179_v24 }
  0x9e   :  { %v189_v25 = vpop.eup %188 }
  0x9f   :  { %v118_v26 = vadd.f32 1.0, %v189_v25 }
  0xa1   :  { %190 = vrcp.f32 %v118_v26  ;;  %v130_v30 = vand.u32 2147483648, %v118_v26  ;;  %v128_v32 = vand.u32 2147483647, %v118_v26  ;;  %vm124_vm2 = vweird.f32 %v118_v26 }
  0xa3   :  { %v131_v34 = vor.u32 1.1754944e-38, %v130_v30  ;;  %vm129_vm4 = vcmp.eq.f32.partialorder %v128_v32, 8.507059e+37 }
  0xa7   :  { %v191_v27 = vpop.eup %190 }
  0xa8   :  { %v120_v28 = vmul.f32 %v191_v27, %v118_v26  ;;  %vm125_vm1 = vweird.f32 %v191_v27 }
  0xa9   :  { %vm126_vm3 = vmor %vm124_vm2, %vm125_vm1 }
  0xaa   :  { %v121_v29 = vsub.f32 1.0, %v120_v28 }
  0xac   :  { %v122_v31 = vmul.f32 %v191_v27, %v121_v29 }
  0xae   :  { %v123_v33 = vadd.f32 %v191_v27, %v122_v31 }
  0xb0   :  { %v127_v35 = vsel %vm126_vm3, %v191_v27, %v123_v33 }
  0xb1   :  { %v132_v36 = vsel %vm129_vm4, %v131_v34, %v127_v35 }
  0xb2   :  { %v134_v37 = vmul.f32 %v132_v36, %v113_v23 }
  0xb4   :  { %155 = vmatmul.f32.vlgmr.msra.gmra.mxu1 %v134_v37 }
 0x131   :  { %v156_v39 = vpop.f32.mrf.mxu1 }
 0x132   :  { %v157_v40 = vadd.f32 %v187_v38, %v156_v39 }
 0x134   :  { %159 = vst [vmem:[#allocation8] sm:$0xff] %v157_v40 }
 0x135   :  { %170 = dma.vmem_to_hbm [thread:$0]  %s166_s11, 128, %s168_s14, [#allocation4]  }
 0x136   :  { %292 = dma.done.wait [#allocation4], 128  }
 0x137   :  { %293 = vsyncadd [#allocation4], 4294967168 }
 0x138   :  { %175 = vsyncpa [#allocation3], 1 }
 0x139   :  { %176 = vsyncpa [#allocation6], 1 }
 0x13a   :  { %177 = vsyncpa [#allocation4], 1 }

</bundles_post_ra>
